<compile_context>
chip_gen: v6e
topology: v6e:2x2x1
jax: 0.10.0
libtpu: 0.0.40
codegen_flags: <defaults>
</compile_context>

<pallas_src>
import functools

import jax
import jax.numpy as jnp
from jax.experimental import pallas as pl
from jax.experimental.pallas import tpu as pltpu


def _round_up(n, m):
    return ((n + m - 1) // m) * m


def _choose_rows(n_rows, row_bytes, target_bytes):
    """Packed rows per grid step: ~target_bytes of input, multiple of 8."""
    r = max(8, (target_bytes // max(1, row_bytes)) // 8 * 8)
    if n_rows <= r:
        return n_rows          # single block covering the whole array
    return r


def _make_kernel(pack, H):
    def kernel(x_ref, sv_ref, o_ref):
        # x_ref : (tm, pack*H) lane-packed input tile (pack logical rows per
        #         packed row, each occupying H consecutive lanes)
        # sv_ref: (1, H) softmax(w) * t, f32, resident across all steps
        # o_ref : (tm, pack) output tile; o[i, k] = result of logical row
        #         pack*i + k, so a flat reshape restores row order for free
        sv = sv_ref[...]                                        # (1, H) f32
        for k in range(pack):                                   # unrolled (pack <= 4 typ.)
            seg = x_ref[:, pl.ds(k * H, H)].astype(jnp.float32)  # (tm, H)
            y = jnp.sum(seg * sv, axis=-1, keepdims=True)        # (tm, 1) f32, exact
            o_ref[:, k:k + 1] = y.astype(o_ref.dtype)
    return kernel


def bert_concat(inputs, w, t, *, block_bytes=2 * 1024 * 1024):
    """BertConcat forward: sum(inputs * softmax(w), -1, keepdims=True) * t.

    inputs: (..., ha)   w: (ha,)   t: (1,)   ->   (..., 1)
    """
    H = int(w.shape[-1])
    assert inputs.shape[-1] == H, "last dim of inputs must equal len(w)"
    lead = inputs.shape[:-1]
    out_dtype = inputs.dtype

    # Fused, precomputed weight vector: softmax(w) * t in f32 (tiny, done once).
    sv = (jax.nn.softmax(w.astype(jnp.float32))
          * t.astype(jnp.float32)[0]).reshape(1, H)

    x2 = inputs.reshape(-1, H)                 # (M, H) flattened rows (free)
    M = x2.shape[0]

    # Lane-packing factor: pack logical rows side by side along the 128 lanes.
    pack = 128 // H if (H <= 128 and 128 % H == 0) else 1
    Mp = _round_up(M, pack)
    if Mp != M:
        # Rare: pad row count up to the packing factor (one extra copy).
        x2 = jnp.pad(x2, ((0, Mp - M), (0, 0)))
    W = pack * H                               # packed row width (128 when packed)
    Mr = Mp // pack                            # number of packed rows
    xp = x2.reshape(Mr, W)                     # free, row-major contiguous

    row_bytes = W * x2.dtype.itemsize
    tm = _choose_rows(Mr, row_bytes, block_bytes)
    grid_m = pl.cdiv(Mr, tm)

    cost = pl.CostEstimate(
        flops=int(2 * M * H),
        transcendentals=0,
        bytes_accessed=int(M * H * x2.dtype.itemsize
                           + M * jnp.dtype(out_dtype).itemsize
                           + H * 4),
    )

    yp = pl.pallas_call(
        _make_kernel(pack, H),
        out_shape=jax.ShapeDtypeStruct((Mr, pack), out_dtype),
        grid_spec=pltpu.PrefetchScalarGridSpec(
            num_scalar_prefetch=0,
            grid=(grid_m,),
            in_specs=[
                pl.BlockSpec((tm, W), lambda i: (i, 0)),   # packed input rows
                pl.BlockSpec((1, H), lambda i: (0, 0)),    # softmax(w)*t, resident
            ],
            out_specs=pl.BlockSpec((tm, pack), lambda i: (i, 0)),
        ),
        compiler_params=pltpu.CompilerParams(
            dimension_semantics=("parallel",)),
        cost_estimate=cost,
    )(xp, sv)

    y = yp.reshape(Mp)[:M]                     # flat row order preserved (free reshape)
    return y.reshape(*lead, 1)


if __name__ == "__main__":
    key = jax.random.PRNGKey(0)
    k_x, k_w, k_t = jax.random.split(key, 3)

    batch, seq_length, ha = 2, 8, 32           # small demo shapes

    x = jax.random.normal(k_x, (batch, seq_length, ha), dtype=jnp.float32)
    # matches torch.nn.init.normal_(Tensor(ha), mean=0, std=0.05)
    w = jax.random.normal(k_w, (ha,), dtype=jnp.float32) * 0.05
    t = jax.random.normal(k_t, (1,), dtype=jnp.float32)

    y = jax.block_until_ready(bert_concat(x, w, t))

    # pure-JAX reference, same semantics as the PyTorch module
    sm = jax.nn.softmax(w)
    y_ref = jnp.sum(x * sm, axis=-1, keepdims=True) * t

    assert y.shape == (batch, seq_length, 1)
    assert jnp.allclose(y, y_ref, atol=1e-5, rtol=1e-5)

    print("KERNEL_OK")
</pallas_src>

<mosaic_0001>
module attributes {stable_mosaic.version = 11 : i64} {
  func.func @kernel(%arg0: i32, %arg1: memref<4x128xf32, #tpu.memory_space<vmem>>, %arg2: memref<1x32xf32, #tpu.memory_space<vmem>>, %arg3: memref<4x4xf32, #tpu.memory_space<vmem>>) attributes {dimension_semantics = [#tpu.dimension_semantics<parallel>], iteration_bounds = array<i64: 1>, scalar_prefetch = 0 : i64, scratch_operands = 0 : i64, tpu.core_type = #tpu.core_type<tc>, window_params = [{transform_indices = @transform_0, window_bounds = array<i64: 4, 128>}, {pipeline_mode = #tpu.pipeline_mode<synchronous>, transform_indices = @transform_1, window_bounds = array<i64: 1, 32>}, {transform_indices = @transform_2, window_bounds = array<i64: 4, 4>}]} {
    %c0 = arith.constant 0 : index
    %c0_0 = arith.constant 0 : index
    %0 = vector.load %arg2[%c0, %c0_0] : memref<1x32xf32, #tpu.memory_space<vmem>>, vector<1x32xf32>
    %c0_1 = arith.constant 0 : index
    %c0_2 = arith.constant 0 : index
    %1 = vector.load %arg1[%c0_1, %c0_2] : memref<4x128xf32, #tpu.memory_space<vmem>>, vector<4x32xf32>
    %2 = vector.broadcast %0 : vector<1x32xf32> to vector<4x32xf32>
    %3 = arith.mulf %1, %2 : vector<4x32xf32>
    %cst = arith.constant dense<0.000000e+00> : vector<4xf32>
    %4 = vector.multi_reduction <add>, %3, %cst [1] : vector<4x32xf32> to vector<4xf32>
    %5 = vector.shape_cast %4 : vector<4xf32> to vector<4x1xf32>
    %c0_3 = arith.constant 0 : index
    %c0_4 = arith.constant 0 : index
    %6 = vector.load %arg3[%c0_3, %c0_4] : memref<4x4xf32, #tpu.memory_space<vmem>>, vector<4x1xf32>
    tpu.vector_store %arg3[%c0_3, %c0_4], %5 {strides = array<i32>} : memref<4x4xf32, #tpu.memory_space<vmem>>, vector<4x1xf32>,
    %c0_5 = arith.constant 0 : index
    %c32 = arith.constant 32 : index
    %7 = vector.load %arg1[%c0_5, %c32] : memref<4x128xf32, #tpu.memory_space<vmem>>, vector<4x32xf32>
    %8 = vector.broadcast %0 : vector<1x32xf32> to vector<4x32xf32>
    %9 = arith.mulf %7, %8 : vector<4x32xf32>
    %cst_6 = arith.constant dense<0.000000e+00> : vector<4xf32>
    %10 = vector.multi_reduction <add>, %9, %cst_6 [1] : vector<4x32xf32> to vector<4xf32>
    %11 = vector.shape_cast %10 : vector<4xf32> to vector<4x1xf32>
    %c0_7 = arith.constant 0 : index
    %c1 = arith.constant 1 : index
    %12 = vector.load %arg3[%c0_7, %c1] : memref<4x4xf32, #tpu.memory_space<vmem>>, vector<4x1xf32>
    tpu.vector_store %arg3[%c0_7, %c1], %11 {strides = array<i32>} : memref<4x4xf32, #tpu.memory_space<vmem>>, vector<4x1xf32>,
    %c0_8 = arith.constant 0 : index
    %c64 = arith.constant 64 : index
    %13 = vector.load %arg1[%c0_8, %c64] : memref<4x128xf32, #tpu.memory_space<vmem>>, vector<4x32xf32>
    %14 = vector.broadcast %0 : vector<1x32xf32> to vector<4x32xf32>
    %15 = arith.mulf %13, %14 : vector<4x32xf32>
    %cst_9 = arith.constant dense<0.000000e+00> : vector<4xf32>
    %16 = vector.multi_reduction <add>, %15, %cst_9 [1] : vector<4x32xf32> to vector<4xf32>
    %17 = vector.shape_cast %16 : vector<4xf32> to vector<4x1xf32>
    %c0_10 = arith.constant 0 : index
    %c2 = arith.constant 2 : index
    %18 = vector.load %arg3[%c0_10, %c2] : memref<4x4xf32, #tpu.memory_space<vmem>>, vector<4x1xf32>
    tpu.vector_store %arg3[%c0_10, %c2], %17 {strides = array<i32>} : memref<4x4xf32, #tpu.memory_space<vmem>>, vector<4x1xf32>,
    %c0_11 = arith.constant 0 : index
    %c96 = arith.constant 96 : index
    %19 = vector.load %arg1[%c0_11, %c96] : memref<4x128xf32, #tpu.memory_space<vmem>>, vector<4x32xf32>
    %20 = vector.broadcast %0 : vector<1x32xf32> to vector<4x32xf32>
    %21 = arith.mulf %19, %20 : vector<4x32xf32>
    %cst_12 = arith.constant dense<0.000000e+00> : vector<4xf32>
    %22 = vector.multi_reduction <add>, %21, %cst_12 [1] : vector<4x32xf32> to vector<4xf32>
    %23 = vector.shape_cast %22 : vector<4xf32> to vector<4x1xf32>
    %c0_13 = arith.constant 0 : index
    %c3 = arith.constant 3 : index
    %24 = vector.load %arg3[%c0_13, %c3] : memref<4x4xf32, #tpu.memory_space<vmem>>, vector<4x1xf32>
    tpu.vector_store %arg3[%c0_13, %c3], %23 {strides = array<i32>} : memref<4x4xf32, #tpu.memory_space<vmem>>, vector<4x1xf32>,
    return
  }
  func.func @transform_0(%arg0: i32) -> (i32, i32) {
    %c0_i32 = arith.constant 0 : i32
    %c0_i32_0 = arith.constant 0 : i32
    return %arg0, %c0_i32 : i32, i32
  }
  func.func @transform_1(%arg0: i32) -> (i32, i32) {
    %c0_i32 = arith.constant 0 : i32
    %c0_i32_0 = arith.constant 0 : i32
    %c0_i32_1 = arith.constant 0 : i32
    return %c0_i32, %c0_i32_0 : i32, i32
  }
  func.func @transform_2(%arg0: i32) -> (i32, i32) {
    %c0_i32 = arith.constant 0 : i32
    %c0_i32_0 = arith.constant 0 : i32
    return %arg0, %c0_i32 : i32, i32
  }
}

</mosaic_0001>

<bundles_post_ra>
// kernel: tpu_custom_call.1
= control target key start
LH: loop header
LB: loop body
LE: loop exit
PB: predicated region body
PF: predicated region fallthrough
CT: control target
= control target key end

     0   :  { %7 = vsyncpa [#allocation3], 0  ;;  %s175_s0 = inlined_call_operand.hbm [shape: f32[4,128], index: 0, kind: input, shape index: {}]   ;;  %s176_s1 = inlined_call_operand.vmem [shape: f32[1,32], index: 1, kind: input, shape index: {}]   ;;  %s177_s2 = inlined_call_operand.hbm [shape: f32[4,4], index: 2, kind: output, shape index: {}]  }
   0x1   :  { %8 = vsyncpa [#allocation4], 0  ;;  %s146_s9 = smov [#allocation2]  }
   0x2   :  { %s15_s10 = sshll.u32 %s146_s9, 4  ;;  %s16_s10 = int_to_ptr.vmem [resolvable:$true] %s15_s10 }
   0x3   :  { %s110_s11 = scalar_lea.vmem %s16_s10, 64  ;;  %p115_p1 = scmp.lt.s32.totalorder %s16_s10, %s16_s10 }
   0x4   :  { %p111_p0 = scmp.ne.s32.totalorder %s16_s10, %s110_s11  ;;  %p116_p2 = scmp.lt.s32.totalorder %s110_s11, %s110_s11 }
   0x6   :  { %p117_p3 = por %p116_p2, %p115_p1 }
   0x8   :  { %p118_p4 = pnand %p117_p3, %p111_p0 }
   0xa   :  { %121 = shalt.err (!%p118_p4)
}
   0xb   :  { %18 = dma.hbm_to_vmem [thread:$0]  %s175_s0, 64, %s16_s10, [#allocation3]  }
   0xc   :  { %142 = dma.done.wait [#allocation3], 64  }
   0xd   :  { %143 = vsyncadd [#allocation3], 4294967232  ;;  %v96_v0 = vld [vmem:[%s176_s1] ss:$0 sm:$0xff]  ;;  %s147_s16 = smov 32   ;;  %s148_s17 = smov 96  }
   0xe   :  { %40 = vrot.lane.b32.xlu0 %v96_v0, %s147_s16  ;;  %68 = vrot.lane.b32.xlu1 %v96_v0, %s148_s17  ;;  %s149_s18 = smov 64   ;;  %v39_v1 = vld [vmem:[#allocation2] sm:$0xf]  ;;  %vm33_vm0 = vcmask 257024   ;;  %vm37_vm1 = vcmask 3072   ;;  %vm51_vm2 = vcmask 11272  }
   0xf   :  { %v67_v3 = vld [vmem:[#allocation2] sm:$0xf]  ;;  %vm65_vm3 = vcmask 19472   ;;  %s150_s0 = smov [#allocation5]   ;;  %vm79_vm4 = vcmask 27672  }
  0x10   :  { %v53_v6 = vld [vmem:[#allocation2] sm:$0xf]  ;;  %s87_s1 = sshll.u32 %s150_s0, 4  ;;  %s88_s1 = int_to_ptr.vmem [resolvable:$true] %s87_s1 }
  0x11   :  { %v25_v10 = vld [vmem:[#allocation2] sm:$0xf]  ;;  %s122_s19 = scalar_lea.vmem %s88_s1, 64  ;;  %p127_p6 = scmp.lt.s32.totalorder %s88_s1, %s88_s1 }
  0x12   :  { %54 = vrot.lane.b32.xlu0 %v96_v0, %s149_s18  ;;  %v32_v11 = vmul.f32 %v96_v0, %v25_v10  ;;  %p123_p5 = scmp.ne.s32.totalorder %s88_s1, %s122_s19  ;;  %p128_p7 = scmp.lt.s32.totalorder %s122_s19, %s122_s19 }
  0x14   :  { %v34_v12 = vsel %vm33_vm0, %v32_v11, 0.0  ;;  %p129_p8 = por %p128_p7, %p127_p6 }
  0x16   :  { %p130_p9 = pnand %p129_p8, %p123_p5 }
  0x80   :  { %v41_v2 = vpop.permute.xlu0 %40  ;;  %v69_v4 = vpop.permute.xlu1 %68 }
  0x81   :  { %v43_v5 = vmul.f32 %v41_v2, %v39_v1  ;;  %v71_v7 = vmul.f32 %v69_v4, %v67_v3 }
  0x83   :  { %45 = vrot.lane.b32.xlu1 %v43_v5, %s148_s17 }
  0x84   :  { %v55_v8 = vpop.permute.xlu0 %54 }
  0x85   :  { %v57_v9 = vmul.f32 %v55_v8, %v53_v6 }
  0x87   :  { %59 = vrot.lane.b32.xlu0 %v57_v9, %s149_s18  ;;  %73 = vrot.lane.b32.xlu1 %v71_v7, %s147_s16 }
  0xa6   :  { %35 = vadd.xlane.f32.xlu0 %v34_v12 }
  0xf5   :  { %v46_v13 = vpop.permute.xlu1 %45 }
  0xf6   :  { %v48_v14 = vsel %vm33_vm0, %v46_v13, 0.0 }
  0xf7   :  { %49 = vadd.xlane.f32.xlu1 %v48_v14 }
  0xf9   :  { %v60_v15 = vpop.permute.xlu0 %59  ;;  %v74_v16 = vpop.permute.xlu1 %73 }
  0xfa   :  { %v62_v17 = vsel %vm33_vm0, %v60_v15, 0.0  ;;  %v76_v18 = vsel %vm33_vm0, %v74_v16, 0.0 }
  0xfb   :  { %63 = vadd.xlane.f32.xlu0 %v62_v17 }
  0xff   :  { %77 = vadd.xlane.f32.xlu0 %v76_v18 }
 0x12f   :  { %v36_v19 = vpop.xlane.xlu0 %35 }
 0x130   :  { %38 = vst.msk [vmem:[#allocation5] sm:$0xf] %vm37_vm1, %v36_v19 }
 0x180   :  { %v50_v20 = vpop.xlane.xlu1 %49 }
 0x181   :  { %52 = vst.msk [vmem:[#allocation5] sm:$0xf] %vm51_vm2, %v50_v20 }
 0x184   :  { %v64_v21 = vpop.xlane.xlu0 %63 }
 0x185   :  { %66 = vst.msk [vmem:[#allocation5] sm:$0xf] %vm65_vm3, %v64_v21 }
 0x188   :  { %v78_v22 = vpop.xlane.xlu0 %77 }
 0x189   :  { %80 = vst.msk [vmem:[#allocation5] sm:$0xf] %vm79_vm4, %v78_v22 }
 0x18a   :  { %133 = shalt.err (!%p130_p9)
}
 0x18b   :  { %90 = dma.vmem_to_hbm [thread:$0]  %s88_s1, 64, %s177_s2, [#allocation4]  }
 0x18c   :  { %144 = dma.done.wait [#allocation4], 64  }
 0x18d   :  { %145 = vsyncadd [#allocation4], 4294967232 }
 0x18e   :  { %94 = vsyncpa [#allocation3], 1 }
 0x18f   :  { %95 = vsyncpa [#allocation4], 1 }

</bundles_post_ra>
